<compile_context>
chip_gen: v7x
topology: tpu7x:2x2x1
jax: 0.10.0
libtpu: 0.0.40
codegen_flags: <defaults>
</compile_context>

<pallas_src>
import functools

import jax
import jax.numpy as jnp
from jax.experimental import pallas as pl
from jax.experimental.pallas import tpu as pltpu


def _round_up(x: int, m: int) -> int:
    return ((x + m - 1) // m) * m


def prepare_head_params(w_dense, b_dense, w_out, b_out):
    """One-time (model-load-time) parameter preprocessing.

    Weights use the x @ W convention, are cast to bf16 for the MXU, and the
    out_proj weight/bias are zero-padded so the label axis is a multiple of
    128 lanes (unmasked, lane-dense stores).  Cache the result with the model
    parameters; do NOT call this inside the per-step forward.
    """
    h_in, h = w_dense.shape
    num_labels = w_out.shape[1]
    lp = _round_up(max(num_labels, 128), 128)

    w1 = w_dense.astype(jnp.bfloat16)                                   # (H_in, H)
    b1 = b_dense.reshape(1, h).astype(jnp.float32)                      # (1, H)
    w2 = jnp.zeros((h, lp), jnp.bfloat16).at[:, :num_labels].set(
        w_out.astype(jnp.bfloat16))                                     # (H, Lp)
    b2 = jnp.zeros((1, lp), jnp.float32).at[:, :num_labels].set(
        b_out.reshape(1, num_labels).astype(jnp.float32))               # (1, Lp)
    return w1, b1, w2, b2


def _cls_head_kernel(x_ref, w1_ref, b1_ref, w2_ref, b2_ref, out_ref):
    # x:  (TILE_N, H_in) f32/bf16   w1: (H_in, H) bf16   b1: (1, H)  f32
    # w2: (H, Lp)        bf16       b2: (1, Lp)    f32   out: (TILE_N, Lp) f32
    x = x_ref[...].astype(jnp.bfloat16)   # no-op if upstream already feeds bf16

    # dense: x @ W1 + b1 on the MXU with f32 accumulation.
    h = jnp.dot(x, w1_ref[...], preferred_element_type=jnp.float32)
    h = jnp.tanh(h + b1_ref[...])         # f32 bias add (VPU) + tanh (EUP)

    # out_proj: h @ W2 + b2 (label axis lane-padded to Lp for dense stores).
    out = jnp.dot(h.astype(jnp.bfloat16), w2_ref[...],
                  preferred_element_type=jnp.float32)
    out_ref[...] = (out + b2_ref[...]).astype(out_ref.dtype)


@functools.partial(jax.jit, static_argnames=("tile_n",))
def layoutlmv3_classification_head(x, w1, b1, w2, b2, *, tile_n=1024):
    """Forward pass (inference; dropout == identity).

    x : (N, H_in) f32 or bf16 — flattened tokens/CLS features.
    w1, b1, w2, b2 : outputs of prepare_head_params (cached, not rebuilt here).
    Returns (N, Lp) f32 logits, lane-padded on the label axis; columns
    >= num_labels are exact zeros.  Slice [:, :num_labels] downstream only
    if a consumer cannot take the padded layout.
    """
    n, h_in = x.shape
    h = w1.shape[1]
    lp = w2.shape[1]

    # Keep the tile a multiple of 8 sublanes and guarantee >= 2 grid steps so
    # dimension_semantics=("parallel",) can use both v7x TensorCores.
    tile_n = max(8, min(_round_up(tile_n, 8), _round_up(pl.cdiv(n, 2), 8)))
    grid = (pl.cdiv(n, tile_n),)   # ragged last block: OOB stores are masked

    return pl.pallas_call(
        _cls_head_kernel,
        out_shape=jax.ShapeDtypeStruct((n, lp), jnp.float32),
        grid_spec=pl.GridSpec(
            grid=grid,
            in_specs=[
                # x tile streams along the grid (default double-buffered).
                pl.BlockSpec((tile_n, h_in), lambda i: (i, 0)),
                # Weights / biases: constant block index -> resident in VMEM;
                # single-buffered (second buffer would be pure waste).
                pl.BlockSpec((h_in, h), lambda i: (0, 0),
                             pipeline_mode=pl.Buffered(1)),
                pl.BlockSpec((1, h), lambda i: (0, 0),
                             pipeline_mode=pl.Buffered(1)),
                pl.BlockSpec((h, lp), lambda i: (0, 0),
                             pipeline_mode=pl.Buffered(1)),
                pl.BlockSpec((1, lp), lambda i: (0, 0),
                             pipeline_mode=pl.Buffered(1)),
            ],
            out_specs=pl.BlockSpec((tile_n, lp), lambda i: (i, 0)),
        ),
        compiler_params=pltpu.CompilerParams(
            # Independent row tiles -> shard N across TensorCores on v7x.
            dimension_semantics=("parallel",),
            # Big enough for tile_n=1024 @ H=1024 double-buffered x/out plus
            # intermediates, yet leaves headroom under v7x's 64 MiB VMEM.
            vmem_limit_bytes=48 * 1024 * 1024,
        ),
    )(x, w1, b1, w2, b2)


if __name__ == "__main__":
    # Small synthetic config consistent with the module (real target shapes
    # are H=768/1024, N=batch*seq in the thousands; this is a smoke test).
    batch, seq, hidden, num_labels = 2, 8, 32, 8
    N = batch * seq

    key = jax.random.PRNGKey(0)
    k_x, k_w1, k_b1, k_w2, k_b2 = jax.random.split(key, 5)

    x = jax.random.normal(k_x, (batch, seq, hidden), dtype=jnp.float32)
    x2d = x.reshape(N, hidden)

    # nn.Linear weights pre-transposed for the x @ W convention.
    w_dense = jax.random.normal(k_w1, (hidden, hidden), jnp.float32) * 0.02
    b_dense = jax.random.normal(k_b1, (hidden,), jnp.float32) * 0.02
    w_out = jax.random.normal(k_w2, (hidden, num_labels), jnp.float32) * 0.02
    b_out = jax.random.normal(k_b2, (num_labels,), jnp.float32) * 0.02

    # One-time preprocessing (model-load time, outside the forward hot path).
    params = prepare_head_params(w_dense, b_dense, w_out, b_out)

    out_padded = layoutlmv3_classification_head(x2d, *params)
    jax.block_until_ready(out_padded)

    # Reference check (plain f32 JAX); tolerance loosened for bf16 matmuls.
    out = out_padded[:, :num_labels].reshape(batch, seq, num_labels)
    ref = (jnp.tanh(x2d @ w_dense + b_dense) @ w_out + b_out)
    ref = ref.reshape(batch, seq, num_labels)
    assert jnp.allclose(out, ref, atol=2e-2, rtol=2e-2), "mismatch vs reference"
    assert bool(jnp.all(out_padded[:, num_labels:] == 0.0)), "padding not zero"

    # Ragged-N path (N % tile_n != 0, no jnp.pad): last block's OOB rows are
    # masked on store; verify against the reference.
    N2 = 13
    x_ragged = jax.random.normal(jax.random.PRNGKey(1), (N2, hidden),
                                 dtype=jnp.float32)
    out_r = layoutlmv3_classification_head(x_ragged, *params)
    jax.block_until_ready(out_r)
    ref_r = jnp.tanh(x_ragged @ w_dense + b_dense) @ w_out + b_out
    assert jnp.allclose(out_r[:, :num_labels], ref_r, atol=2e-2, rtol=2e-2), \
        "ragged-N mismatch vs reference"

    print("KERNEL_OK")
</pallas_src>

<mosaic_0001>
module attributes {stable_mosaic.version = 11 : i64} {
  func.func @_cls_head_kernel(%arg0: i32, %arg1: memref<8x32xf32, #tpu.memory_space<vmem>>, %arg2: memref<32x32xbf16, #tpu.memory_space<vmem>>, %arg3: memref<1x32xf32, #tpu.memory_space<vmem>>, %arg4: memref<32x128xbf16, #tpu.memory_space<vmem>>, %arg5: memref<1x128xf32, #tpu.memory_space<vmem>>, %arg6: memref<8x128xf32, #tpu.memory_space<vmem>>) attributes {dimension_semantics = [#tpu.dimension_semantics<parallel>], iteration_bounds = array<i64: 2>, scalar_prefetch = 0 : i64, scratch_operands = 0 : i64, tpu.core_type = #tpu.core_type<tc>, window_params = [{transform_indices = @transform_0, window_bounds = array<i64: 8, 32>}, {pipeline_mode = #tpu.pipeline_mode<synchronous>, transform_indices = @transform_1, window_bounds = array<i64: 32, 32>}, {pipeline_mode = #tpu.pipeline_mode<synchronous>, transform_indices = @transform_2, window_bounds = array<i64: 1, 32>}, {pipeline_mode = #tpu.pipeline_mode<synchronous>, transform_indices = @transform_3, window_bounds = array<i64: 32, 128>}, {pipeline_mode = #tpu.pipeline_mode<synchronous>, transform_indices = @transform_4, window_bounds = array<i64: 1, 128>}, {transform_indices = @transform_5, window_bounds = array<i64: 8, 128>}]} {
    %c0 = arith.constant 0 : index
    %c0_0 = arith.constant 0 : index
    %0 = vector.load %arg1[%c0, %c0_0] : memref<8x32xf32, #tpu.memory_space<vmem>>, vector<8x32xf32>
    %1 = arith.truncf %0 : vector<8x32xf32> to vector<8x32xbf16>
    %c0_1 = arith.constant 0 : index
    %c0_2 = arith.constant 0 : index
    %2 = vector.load %arg2[%c0_1, %c0_2] : memref<32x32xbf16, #tpu.memory_space<vmem>>, vector<32x32xbf16>
    %cst = arith.constant dense<0.000000e+00> : vector<8x32xf32>
    %3 = tpu.matmul %1, %2, %cst {dimension_numbers = #tpu.dot_dimension_numbers<[1], [0], [0], [1], [0, 0, 1, 1], [], []>} : vector<8x32xbf16>, vector<32x32xbf16>, vector<8x32xf32> -> vector<8x32xf32>
    %c0_3 = arith.constant 0 : index
    %c0_4 = arith.constant 0 : index
    %4 = vector.load %arg3[%c0_3, %c0_4] : memref<1x32xf32, #tpu.memory_space<vmem>>, vector<1x32xf32>
    %5 = vector.broadcast %4 : vector<1x32xf32> to vector<8x32xf32>
    %6 = arith.addf %3, %5 : vector<8x32xf32>
    %7 = math.tanh %6 : vector<8x32xf32>
    %8 = arith.truncf %7 : vector<8x32xf32> to vector<8x32xbf16>
    %c0_5 = arith.constant 0 : index
    %c0_6 = arith.constant 0 : index
    %9 = vector.load %arg4[%c0_5, %c0_6] : memref<32x128xbf16, #tpu.memory_space<vmem>>, vector<32x128xbf16>
    %cst_7 = arith.constant dense<0.000000e+00> : vector<8x128xf32>
    %10 = tpu.matmul %8, %9, %cst_7 {dimension_numbers = #tpu.dot_dimension_numbers<[1], [0], [0], [1], [0, 0, 1, 1], [], []>} : vector<8x32xbf16>, vector<32x128xbf16>, vector<8x128xf32> -> vector<8x128xf32>
    %c0_8 = arith.constant 0 : index
    %c0_9 = arith.constant 0 : index
    %11 = vector.load %arg5[%c0_8, %c0_9] : memref<1x128xf32, #tpu.memory_space<vmem>>, vector<1x128xf32>
    %12 = vector.broadcast %11 : vector<1x128xf32> to vector<8x128xf32>
    %13 = arith.addf %10, %12 : vector<8x128xf32>
    %c0_10 = arith.constant 0 : index
    %c0_11 = arith.constant 0 : index
    %14 = vector.load %arg6[%c0_10, %c0_11] : memref<8x128xf32, #tpu.memory_space<vmem>>, vector<8x128xf32>
    tpu.vector_store %arg6[%c0_10, %c0_11], %13 {strides = array<i32>} : memref<8x128xf32, #tpu.memory_space<vmem>>, vector<8x128xf32>,
    return
  }
  func.func @transform_0(%arg0: i32) -> (i32, i32) {
    %c0_i32 = arith.constant 0 : i32
    %c0_i32_0 = arith.constant 0 : i32
    return %arg0, %c0_i32 : i32, i32
  }
  func.func @transform_1(%arg0: i32) -> (i32, i32) {
    %c0_i32 = arith.constant 0 : i32
    %c0_i32_0 = arith.constant 0 : i32
    %c0_i32_1 = arith.constant 0 : i32
    return %c0_i32, %c0_i32_0 : i32, i32
  }
  func.func @transform_2(%arg0: i32) -> (i32, i32) {
    %c0_i32 = arith.constant 0 : i32
    %c0_i32_0 = arith.constant 0 : i32
    %c0_i32_1 = arith.constant 0 : i32
    return %c0_i32, %c0_i32_0 : i32, i32
  }
  func.func @transform_3(%arg0: i32) -> (i32, i32) {
    %c0_i32 = arith.constant 0 : i32
    %c0_i32_0 = arith.constant 0 : i32
    %c0_i32_1 = arith.constant 0 : i32
    return %c0_i32, %c0_i32_0 : i32, i32
  }
  func.func @transform_4(%arg0: i32) -> (i32, i32) {
    %c0_i32 = arith.constant 0 : i32
    %c0_i32_0 = arith.constant 0 : i32
    %c0_i32_1 = arith.constant 0 : i32
    return %c0_i32, %c0_i32_0 : i32, i32
  }
  func.func @transform_5(%arg0: i32) -> (i32, i32) {
    %c0_i32 = arith.constant 0 : i32
    %c0_i32_0 = arith.constant 0 : i32
    return %arg0, %c0_i32 : i32, i32
  }
}

</mosaic_0001>

<bundles_post_ra>
// kernel: layoutlmv3_classification_head.1
= control target key start
LH: loop header
LB: loop body
LE: loop exit
PB: predicated region body
PF: predicated region fallthrough
CT: control target
= control target key end

     0   :  { %10 = vsyncpa [#allocation3], 0  ;;  %s1071_s0 = inlined_call_operand.hbm [shape: f32[16,32], index: 0, kind: input, shape index: {}]   ;;  %s1072_s1 = inlined_call_operand.hbm [shape: bf16[32,32], index: 1, kind: input, shape index: {}]   ;;  %s1073_s2 = inlined_call_operand.vmem [shape: f32[1,32], index: 2, kind: input, shape index: {}]   ;;  %s1074_s3 = inlined_call_operand.hbm [shape: bf16[32,128], index: 3, kind: input, shape index: {}]   ;;  %s1075_s4 = inlined_call_operand.vmem [shape: f32[1,128], index: 4, kind: input, shape index: {}]   ;;  %s1076_s5 = inlined_call_operand.hbm [shape: f32[16,128], index: 5, kind: output, shape index: {}]  }
   0x1   :  { %12 = vsyncpa [#allocation3 + $0x1], 0 }
   0x2   :  { %13 = vsyncpa [#allocation6], 0 }
   0x3   :  { %14 = vsyncpa [#allocation4], 0 }
   0x4   :  { %16 = vsyncpa [#allocation4 + $0x1], 0  ;;  %s830_s18 = smov 0   ;;  %s832_s19 = smov 0  }
   0x5   :  { %s834_s20 = smov 0   ;;  %s836_s21 = smov 0  }
   0x6 LB: > { %s851_s22 = sadd.s32 4294967295, %s790_s21   ;;  %s511_s23 = sadd.s32 4294967294, %s790_s21   ;;  %s790_s21 = sphi %s836_s21, %s1096_s21   ;;  %s786_s20 = sphi %s834_s20, %s1095_s20   ;;  %s782_s19 = sphi %s832_s19, %s1094_s19   ;;  %s778_s18 = sphi %s830_s18, %s1093_s18  }
   0x7   : > { %p42_p0 = scmp.ne.s32.totalorder %s782_s19, %s778_s18  ;;  %p1077_p1 = scmp.eq.s32.totalorder %s851_s22, 0 }
   0x8   : > { %p156_p3 = scmp.eq.s32.totalorder %s511_s23, 1  ;;  %p512_p5 = scmp.ge.s32.totalorder %s790_s21, 1 }
   0x9   : > { %p860_p4 = por %p1077_p1, %p42_p0  ;;  %p163_p7 = scmp.lt.s32.totalorder %s790_s21, 3 }
   0xa   : > { %p865_p6 = por %p156_p3, %p42_p0  ;;  %s792_s27 = smov [#allocation5]  }
   0xb   : > { %s1080_s24 = scalar_select %p860_p4, 1, 0 }
   0xc   : > { %s1081_s25 = scalar_select %p865_p6, 1, 0 }
   0xd   : > { %p870_p8 = pnand %p512_p5, %p163_p7  ;;  %s175_s28 = sshll.u32 %s792_s27, 4  ;;  %s874_s28 = int_to_ptr.vmem [resolvable:$true] %s175_s28 }
   0xe   : > { %s793_s30 = smov [#allocation7]   ;;  %s634_s9 = scalar_lea.hbm %s1072_s1, 256 }
   0xf   : > { %p569_p9 = pneg %p870_p8  ;;  %s191_s6 = sshll.u32 %s793_s30, 4  ;;  %s885_s6 = int_to_ptr.vmem [resolvable:$true] %s191_s6 }
  0x10   : > { %p635_p12 = scmp.ne.s32.totalorder %s1072_s1, %s634_s9  ;;  %p641_p5 = scmp.lt.u32.totalorder %s634_s9, %s1072_s1 }
  0x11   : > { %p881_p11 = pnand %p569_p9, %p1077_p1 }
  0x13   : > { %p636_p13 = pneg %p881_p11 }
  0x15   : > { %p637_p0 = pnand %p636_p13, %p635_p12 }
  0x17   : > { %p638_p3 = pneg %p637_p0 }
  0x19   : > { %p643_p7 = pnand %p641_p5, %p638_p3 }
  0x1b   : > { %646 = shalt.err (!%p643_p7)
}
  0x1c   : > { %s647_s14 = scalar_lea.vmem %s874_s28, 256  ;;  %p655_p2 = scmp.lt.s32.totalorder %s874_s28, %s874_s28 }
  0x1d   : > { %p648_p9 = scmp.ne.s32.totalorder %s874_s28, %s647_s14  ;;  %p656_p12 = scmp.lt.s32.totalorder %s647_s14, %s647_s14 }
  0x1f   : > { %p650_p10 = pnand %p648_p9, %p636_p13  ;;  %p657_p0 = por %p656_p12, %p655_p2 }
  0x21   : > { %p651_p1 = pneg %p650_p10 }
  0x23   : > { %p658_p6 = pnand %p657_p0, %p651_p1 }
  0x25   : > { %661 = shalt.err (!%p658_p6)
}
  0x26   : > { %s794_s15 = smov 64   ;;  %s795_s16 = smov 4  }
  0x27   : > { %572 = dma.hbm_to_vmem [thread:$0]  (!%p881_p11), %s1072_s1, 256, %s874_s28, [#allocation6], %s794_s15, %s794_s15, %s795_s16  }
  0x28   : > { %s662_s7 = scalar_lea.hbm %s1074_s3, 256 }
  0x29   : > { %p663_p2 = scmp.ne.s32.totalorder %s1074_s3, %s662_s7  ;;  %p669_p10 = scmp.lt.u32.totalorder %s662_s7, %s1074_s3 }
  0x2b   : > { %p665_p1 = pnand %p663_p2, %p636_p13 }
  0x2d   : > { %p666_p6 = pneg %p665_p1 }
  0x2f   : > { %p671_p3 = pnand %p669_p10, %p666_p6 }
  0x31   : > { %674 = shalt.err (!%p671_p3)
}
  0x32   : > { %s675_s28 = scalar_lea.vmem %s885_s6, 256  ;;  %p683_p12 = scmp.lt.s32.totalorder %s885_s6, %s885_s6 }
  0x33   : > { %p676_p5 = scmp.ne.s32.totalorder %s885_s6, %s675_s28  ;;  %p684_p0 = scmp.lt.s32.totalorder %s675_s28, %s675_s28 }
  0x35   : > { %p678_p7 = pnand %p676_p5, %p636_p13  ;;  %p685_p2 = por %p684_p0, %p683_p12 }
  0x37   : > { %p679_p9 = pneg %p678_p7 }
  0x39   : > { %p686_p1 = pnand %p685_p2, %p679_p9 }
  0x3b   : > { %689 = shalt.err (!%p686_p1)
}
  0x3c   : > { %575 = dma.hbm_to_vmem [thread:$0]  (!%p881_p11), %s1074_s3, 256, %s885_s6, [#allocation6], %s794_s15, %s794_s15, %s795_s16  }
  0x3d   : > { %s940_s14 = sadd.s32 1, %s790_s21   ;;  %s29_s29 = sadd.s32 1, %s786_s20 }
  0x3e   : > { %s26_s17 = ssub.s32 %s790_s21, %s940_s14  ;;  %p36_p13 = scmp.ne.s32.totalorder %s786_s20, %s782_s19 }
  0x3f   : > { %p27_p6 = scmp.eq.s32.totalorder %s26_s17, 0  ;;  %p37_p10 = scmp.eq.s32.totalorder %s790_s21, 0 }
  0x40   : > { %p1084_p3 = scmp.eq.s32.totalorder %s851_s22, 1  ;;  %p586_p7 = scmp.lt.s32.totalorder %s790_s21, 2 }
  0x41   : > { %s956_s27 = scalar_select %p27_p6, %s786_s20, %s29_s29  }
  0x42   : > { %p950_p5 = por %p1084_p3, %p36_p13  ;;  %p38_p9 = por %p37_p10, %p36_p13 }
  0x43   : > { %s208_s30 = sand.u32 1, %s786_s20   ;;  %s517_s6 = sshll.u32 %s790_s21, 7 }
  0x44   : > { %s1085_s23 = scalar_select %p950_p5, 1, 0 }
  0x45   : > { %s516_s7 = sshll.u32 %s208_s30, 3  ;;  %s963_s8 = scalar_lea.hbm %s1071_s0, %s517_s6 }
  0x46   : > { %s212_s9 = scalar_lea.vmem [#allocation2], %s516_s7  ;;  %p967_p11 = pnand %p586_p7, %p38_p9 }
  0x47   : > { %s219_s10 = sshll.u32 %s212_s9, 4  ;;  %s209_s28 = scalar_lea.sflag [#allocation3], %s208_s30  ;;  %s965_s10 = int_to_ptr.vmem [resolvable:$true] %s219_s10 }
  0x48   : > { %s690_s12 = scalar_lea.hbm %s963_s8, 128  ;;  %p692_p0 = pneg %p967_p11 }
  0x49   : > { %p691_p12 = scmp.ne.s32.totalorder %s963_s8, %s690_s12  ;;  %s695_s17 = scalar_lea.hbm %s1071_s0, 256 }
  0x4a   : > { %p696_p13 = scmp.lt.u32.totalorder %s963_s8, %s1071_s0  ;;  %p697_p6 = scmp.lt.u32.totalorder %s695_s17, %s690_s12 }
  0x4b   : > { %p693_p2 = pnand %p692_p0, %p691_p12  ;;  %p699_p3 = scmp.lt.u32.totalorder %s690_s12, %s963_s8 }
  0x4c   : > { %p698_p10 = por %p697_p6, %p696_p13 }
  0x4d   : > { %p694_p1 = pneg %p693_p2 }
  0x4e   : > { %p700_p7 = por %p699_p3, %p698_p10 }
  0x50   : > { %p701_p9 = pnand %p700_p7, %p694_p1 }
  0x52   : > { %704 = shalt.err (!%p701_p9)
}
  0x53   : > { %s705_s30 = scalar_lea.vmem %s965_s10, 128  ;;  %s796_s15 = smov [#allocation2]  }
  0x54   : > { %p706_p12 = scmp.ne.s32.totalorder %s965_s10, %s705_s30  ;;  %s710_s16 = sshll.u32 %s796_s15, 4  ;;  %s711_s16 = int_to_ptr.vmem [resolvable:$false] %s710_s16 }
  0x55   : > { %s712_s9 = scalar_lea.vmem %s711_s16, 256  ;;  %p713_p4 = scmp.lt.s32.totalorder %s965_s10, %s711_s16 }
  0x56   : > { %p708_p2 = pnand %p706_p12, %p692_p0  ;;  %p714_p13 = scmp.lt.s32.totalorder %s712_s9, %s705_s30 }
  0x58   : > { %p709_p5 = pneg %p708_p2  ;;  %p715_p6 = por %p714_p13, %p713_p4 }
  0x5a   : > { %p716_p10 = pnand %p715_p6, %p709_p5 }
  0x5c   : > { %719 = shalt.err (!%p716_p10)
}
  0x5d   : > { %579 = dma.hbm_to_vmem [thread:$0]  (!%p967_p11), %s963_s8, 128, %s965_s10, %s209_s28  }
  0x5e   : > { %228 = sbr.rel (%p870_p8) target bundleno = 570 (0x23a), region = 40  ;;  %s999_s12 = sand.u32 (!%p870_p8), 1, %s782_s19  }
  0x5f   : > { %s519_s13 = sshll.u32 (!%p870_p8), %s999_s12, 3  ;;  %s231_s29 = scalar_lea.sflag (!%p870_p8), [#allocation3], %s999_s12 }
  0x60   : > { %s234_s17 = scalar_lea.vmem (!%p870_p8), [#allocation2], %s519_s13  ;;  %p1087_p4 = scmp.ne.s32.totalorder (!%p870_p8), %s1080_s24, 0 }
  0x65   : > { %765 = dma.done.wait (%p1087_p4), %s231_s29, 128  }
  0x66   : > { %767 = vsyncadd (%p1087_p4), %s231_s29, 4294967168  ;;  %p1088_p5 = scmp.eq.s32.totalorder %s851_s22, 0 }
  0x68   : > { %769 = dma.done.wait (%p1088_p5), [#allocation6], 512   ;;  %p1089_p8 = pmov %p1088_p5 }
  0x69   : > { %v797_v0 = vmov 0.0   ;;  %vm798_vm0 = vmmov 0   ;;  %v628_v1 = vld [vmem:[#allocation5] sm:$0xff]   ;;  %v629_v2 = vld [vmem:[#allocation5 + $0x8] sm:$0xff]   ;;  %v270_v3 = vld [vmem:[%s234_s17] sm:$0xff]  ;;  %vm295_vm1 = vcmask 261120  }
  0x6a   : > { %771 = vsyncadd (%p1089_p8), [#allocation6], 4294966784  ;;  %541 = vmatprep.subr.bf16.mxu0 %v797_v0  ;;  %545 = vmatprep.mubr.msk.bf16.mxu0 %vm798_vm0, %v797_v0  ;;  %v271_v4 = vpack.c.bf16 %v270_v3, %v270_v3  ;;  %v630_v5 = vld [vmem:[#allocation7] sm:$0xff]   ;;  %v631_v6 = vld [vmem:[#allocation7 + $0x8] sm:$0xff]   ;;  %s532_s11 = sshll.u32 %s851_s22, 7  ;;  %s268_s28 = scalar_lea.vmem [#allocation8], %s519_s13 }
  0x6b   : > { %549 = vmatprep.subr.bf16.mxu1 %v797_v0  ;;  %553 = vmatprep.mubr.msk.bf16.mxu1 %vm798_vm0, %v797_v0  ;;  %v523_v7 = vld [vmem:[%s1073_s2] ss:$0 sm:$0xff]  ;;  %s422_s7 = sshll.u32 %s268_s28, 4  ;;  %s1027_s15 = scalar_lea.hbm %s1076_s5, %s532_s11  ;;  %s1029_s7 = int_to_ptr.vmem [resolvable:$true] %s422_s7 }
  0x6c   : > { %542 = vmatpush3.bf16.msra.mxu0 %v628_v1  ;;  %550 = vmatpush3.bf16.msra.mxu1 %v630_v5  ;;  %v527_v15 = vld [vmem:[%s1075_s4] ss:$0 sm:$0xff]  ;;  %s409_s22 = scalar_lea.sflag [#allocation4], %s999_s12  ;;  %s720_s16 = scalar_lea.vmem %s1029_s7, 128 }
  0x6d   : > { %543 = vmatprep.subr.bf16.mxu0 %v797_v0  ;;  %551 = vmatprep.subr.bf16.mxu1 %v797_v0  ;;  %p721_p11 = scmp.ne.s32.totalorder %s1029_s7, %s720_s16  ;;  %p1090_p0 = scmp.ne.s32.totalorder %s1085_s23, 0 }
  0x6e   : > { %s799_s9 = smov [#allocation8]  }
  0x6f   : > { %p722_p1 = pnand %p721_p11, %p1090_p0  ;;  %s724_s13 = sshll.u32 %s799_s9, 4  ;;  %s725_s13 = int_to_ptr.vmem [resolvable:$false] %s724_s13 }
  0x70   : > { %544 = vmatpush3.bf16.msra.mxu0 %v629_v2  ;;  %552 = vmatpush3.bf16.msra.mxu1 %v631_v6  ;;  %s726_s29 = scalar_lea.vmem %s725_s13, 256  ;;  %p727_p7 = scmp.lt.s32.totalorder %s1029_s7, %s725_s13 }
  0x71   : > { %p723_p3 = pneg %p722_p1  ;;  %p728_p9 = scmp.lt.s32.totalorder %s726_s29, %s720_s16 }
  0x73   : > { %546 = vmatmul.mubr.msk.bf16.vlgmr.msra.gmra.mrb[0].mxu0 %vm295_vm1, %v271_v4  ;;  %p729_p12 = por %p728_p9, %p727_p7 }
  0x75   : > { %p730_p2 = pnand %p729_p12, %p723_p3 }
 0x146   : > { %v333_v8 = vpop.f32.mrb[0].mxu0 }
 0x147   : > { %v334_v9 = vadd.f32 %v523_v7, %v333_v8  ;;  %v547_v10 = vpop.f32.mrb[1].mxu0 }
 0x148   : > { %v336_v11 = vpop.f32.mrb[2].mxu0 }
 0x149   : > { %632 = vtanh.f32 %v334_v9  ;;  %v548_v12 = vpop.f32.mrb[3].mxu0 }
 0x153   : > { %v633_v13 = vpop.eup %632 }
 0x154   : > { %v340_v14 = vpack.c.bf16 %v633_v13, %v633_v13 }
 0x156   : > { %554 = vmatmul.mubr.msk.bf16.vlgmr.msra.gmra.mrb[0].mxu1 %vm295_vm1, %v340_v14 }
 0x229   : > { %v401_v16 = vpop.f32.mrb[0].mxu1 }
 0x22a   : > { %v402_v17 = vadd.f32 %v527_v15, %v401_v16  ;;  %v555_v18 = vpop.f32.mrb[1].mxu1 }
 0x22b   : > { %v404_v19 = vpop.f32.mrb[2].mxu1 }
 0x22c   : > { %407 = vst [vmem:[%s268_s28] sm:$0xff] %v402_v17  ;;  %v556_v20 = vpop.f32.mrb[3].mxu1 }
 0x22d   : > { %733 = shalt.err (!%p730_p2)
}
 0x22e   : > { %s734_s12 = scalar_lea.hbm %s1027_s15, 128  ;;  %s738_s26 = scalar_lea.hbm %s1076_s5, 256 }
 0x22f   : > { %p735_p13 = scmp.ne.s32.totalorder %s1027_s15, %s734_s12  ;;  %p739_p4 = scmp.lt.u32.totalorder %s1027_s15, %s1076_s5 }
 0x230   : > { %p740_p5 = scmp.lt.u32.totalorder %s738_s26, %s734_s12  ;;  %p742_p11 = scmp.lt.u32.totalorder %s734_s12, %s1027_s15 }
 0x231   : > { %p736_p6 = pnand %p735_p13, %p1090_p0 }
 0x232   : > { %p741_p8 = por %p740_p5, %p739_p4 }
 0x233   : > { %p737_p10 = pneg %p736_p6 }
 0x234   : > { %p743_p1 = por %p742_p11, %p741_p8 }
 0x236   : > { %p744_p3 = pnand %p743_p1, %p737_p10 }
 0x238   : > { %747 = shalt.err (!%p744_p3)
}
 0x239   : > { %567 = dma.vmem_to_hbm [thread:$0]  (%p1090_p0), %s1029_s7, 128, %s1027_s15, %s409_s22  }
 0x23a PF: > { %s434_s11 = sand.u32 1, %s778_s18   ;;  %p1091_p7 = scmp.ne.s32.totalorder %s1081_s25, 0 }
 0x23b   : > { %p1092_p9 = scmp.ge.s32.totalorder %s790_s21, 2  ;;  %s435_s28 = scalar_lea.sflag [#allocation4], %s434_s11 }
 0x23d   : > { %p581_p12 = pnand %p1092_p9, %p1091_p7 }
 0x23f   : > { %773 = dma.done.wait (!%p581_p12), %s435_s28, 128  }
 0x240   : > { %775 = vsyncadd (!%p581_p12), %s435_s28, 4294967168  ;;  %p19_p2 = scmp.ge.s32.totalorder %s940_s14, 4   ;;  %s1093_s18 = smov %s782_s19 }
 0x241   : > { %s1094_s19 = smov %s786_s20  ;;  %s1095_s20 = smov %s956_s27 }
 0x242   : > { %s1096_s21 = smov %s940_s14  ;;  %21 = sbr.rel (!%p19_p2) target bundleno = 6 (0x6), region = 93 }
 0x249   :  { %440 = vsyncpa [#allocation3], 1 }
 0x24a   :  { %442 = vsyncpa [#allocation3 + $0x1], 1 }
 0x24b   :  { %443 = vsyncpa [#allocation6], 1 }
 0x24c   :  { %444 = vsyncpa [#allocation4], 1 }
 0x24d   :  { %446 = vsyncpa [#allocation4 + $0x1], 1 }

</bundles_post_ra>
